<compile_context>
chip_gen: v7x
topology: tpu7x:2x2x1
jax: 0.10.0
libtpu: 0.0.40
codegen_flags: <defaults>
</compile_context>

<pallas_src>
import math
from functools import partial, lru_cache

import numpy as np
import jax
import jax.numpy as jnp
from jax.experimental import pallas as pl
from jax.experimental.pallas import tpu as pltpu


MM_DTYPE = jnp.bfloat16   # MXU input dtype (accumulation stays f32)
F_LANE_PAD = 128          # lane-dense padding of the feature-decoder output


# ----------------------------------------------------------------------------
# Small helpers
# ----------------------------------------------------------------------------

def _round_up(x, m):
    return (x + m - 1) // m * m


def _fs(shape):
    """Full-array BlockSpec (block == whole array, constant index map)."""
    n = len(shape)
    return pl.BlockSpec(shape, lambda *_: (0,) * n)


def _mm(a, b):
    """bf16 x bf16 -> f32 MXU matmul."""
    return jnp.dot(a.astype(MM_DTYPE), b.astype(MM_DTYPE),
                   preferred_element_type=jnp.float32)


_ERF_A = (0.254829592, -0.284496736, 1.421413741, -1.453152027, 1.061405429)
_ERF_P = 0.3275911


def _erf_approx(x):
    # Abramowitz & Stegun 7.1.26 (|err| < 1.5e-7): exact-erf GELU semantics built
    # from exp/mul/add/div only, so it lowers cleanly inside a Mosaic kernel.
    sgn = jnp.where(x >= 0.0, 1.0, -1.0)
    ax = jnp.abs(x)
    t = 1.0 / (1.0 + _ERF_P * ax)
    a1, a2, a3, a4, a5 = _ERF_A
    poly = ((((a5 * t + a4) * t + a3) * t + a2) * t + a1) * t
    return sgn * (1.0 - poly * jnp.exp(-ax * ax))


# ----------------------------------------------------------------------------
# Fused Pallas kernels
# ----------------------------------------------------------------------------

def _make_gcn_stack_kernel(block_has_sc, slope):
    """Whole GCN residual stack + L2-normalize + positional-encoding add."""
    def kernel(x_ref, a_ref, pe_ref, pe_w_ref, pe_b_ref, *rest):
        o_ref = rest[-1]
        wr = rest[:-1]
        a_hat = a_ref[...]                     # (N, N) bf16
        h = x_ref[...]                         # (N, Cin) f32
        idx = 0
        for has_sc in block_has_sc:            # static unroll over residual blocks
            w, b, gsc, bb = wr[idx], wr[idx + 1], wr[idx + 2], wr[idx + 3]
            idx += 4
            if has_sc:
                sw, sb = wr[idx], wr[idx + 1]
                idx += 2
                res = _mm(h, sw[...]) + sb[...]
            else:
                res = h
            xw = _mm(h, w[...])                               # X W
            agg = _mm(a_hat, xw) + b[...]                     # A_hat (X W) + bias
            # BatchNorm1d eval (running_mean=0, running_var=1): scale folded on host.
            hbn = agg * gsc[...] + bb[...]
            hbn = jnp.where(hbn >= 0.0, hbn, slope * hbn)     # LeakyReLU(0.1)
            y = hbn + res
            h = jnp.where(y >= 0.0, y, slope * y)             # LeakyReLU(0.1)
        # F.normalize(p=2, dim=1)
        nrm = jnp.sqrt(jnp.sum(h * h, axis=-1, keepdims=True))
        hn = h / jnp.maximum(nrm, 1e-12)
        # batched positional encoding: [wsp | lev] @ blockdiag(wsp_w, le_w) + bias
        pe = _mm(pe_ref[...], pe_w_ref[...]) + pe_b_ref[...]
        o_ref[...] = hn + pe
    return kernel


@lru_cache(maxsize=None)
def _gcn_stack_call(N, Fin, block_dims, P, D, slope):
    # block_dims: tuple of (Cin, Cout, has_shortcut)
    kernel = _make_gcn_stack_kernel(tuple(h for _, _, h in block_dims), slope)
    in_specs = [_fs((N, Fin)), _fs((N, N)), _fs((N, P)), _fs((P, D)), _fs((1, D))]
    for (ci, co, has_sc) in block_dims:
        in_specs += [_fs((ci, co)), _fs((1, co)), _fs((1, co)), _fs((1, co))]
        if has_sc:
            in_specs += [_fs((ci, co)), _fs((1, co))]
    # TODO(synk): for large N, tile A_hat @ (XW) with a (rows, k) grid + f32 acc
    # scratch (and a "parallel" row axis for v7x's two TensorCores).
    return pl.pallas_call(
        kernel,
        out_shape=jax.ShapeDtypeStruct((N, D), jnp.float32),
        grid=(1,),
        in_specs=in_specs,
        out_specs=_fs((N, D)),
    )


def _tstack_kernel(x_ref, cls_ref, iscls_ref, mask_ref,
                   win_ref, bin_ref, wout_ref, bout_ref,
                   ln1g_ref, ln1b_ref, w1_ref, b1_ref, w2_ref, b2_ref,
                   ln2g_ref, ln2b_ref, o_ref, cat_ref,
                   *, nhead, activation, eps=1e-5):
    """Whole nn.TransformerEncoder stack: grid axis = layer, activations resident."""
    l = pl.program_id(0)

    @pl.when(l == 0)
    def _():
        # Insert the CLS token rows in-kernel (padded rows keep whatever x holds;
        # they are masked as keys and their outputs are discarded downstream).
        o_ref[...] = jnp.where(iscls_ref[...] > 0.5, cls_ref[...], x_ref[...])

    x = o_ref[...]                      # (M, D) f32, carried across layer steps
    M, D = x.shape
    Dh = D // nhead
    scale = 1.0 / math.sqrt(Dh)
    mask = mask_ref[...]                # (M, M) block-diagonal additive mask

    # --- multi-head self-attention (flattened dense matmuls, per-head scores) ---
    qkv = _mm(x, win_ref[0]) + bin_ref[0]                   # (M, 3D)
    for h in range(nhead):                                   # static unroll, nhead tiny
        qh = qkv[:, h * Dh:(h + 1) * Dh]
        kh = qkv[:, D + h * Dh:D + (h + 1) * Dh]
        vh = qkv[:, 2 * D + h * Dh:2 * D + (h + 1) * Dh]
        s = jax.lax.dot_general(qh.astype(MM_DTYPE), kh.astype(MM_DTYPE),
                                (((1,), (1,)), ((), ())),
                                preferred_element_type=jnp.float32) * scale + mask
        s = s - jnp.max(s, axis=-1, keepdims=True)
        p = jnp.exp(s)
        p = p * pl.reciprocal(jnp.sum(p, axis=-1, keepdims=True), approx=True)
        cat_ref[:, h * Dh:(h + 1) * Dh] = _mm(p, vh)         # head output lane slice
    attn = _mm(cat_ref[...], wout_ref[0]) + bout_ref[0]      # single fused out-proj

    # residual + LayerNorm 1 (post-LN)
    y = x + attn
    mu = jnp.mean(y, axis=-1, keepdims=True)
    var = jnp.mean((y - mu) ** 2, axis=-1, keepdims=True)
    x1 = (y - mu) * jax.lax.rsqrt(var + eps) * ln1g_ref[0] + ln1b_ref[0]

    # feed-forward
    hdn = _mm(x1, w1_ref[0]) + b1_ref[0]
    if activation == "gelu":
        hdn = 0.5 * hdn * (1.0 + _erf_approx(hdn * (1.0 / math.sqrt(2.0))))
    else:  # relu
        hdn = jnp.maximum(hdn, 0.0)
    ffn = _mm(hdn, w2_ref[0]) + b2_ref[0]

    # residual + LayerNorm 2
    y2 = x1 + ffn
    mu2 = jnp.mean(y2, axis=-1, keepdims=True)
    var2 = jnp.mean((y2 - mu2) ** 2, axis=-1, keepdims=True)
    o_ref[...] = (y2 - mu2) * jax.lax.rsqrt(var2 + eps) * ln2g_ref[0] + ln2b_ref[0]


@lru_cache(maxsize=None)
def _tstack_call(M, D, L, nhead, activation):
    kernel = partial(_tstack_kernel, nhead=nhead, activation=activation)

    def wspec(shape):   # per-layer stacked weight, indexed by the layer grid axis
        return pl.BlockSpec((1,) + shape, lambda l: (l,) + (0,) * len(shape))

    def cspec(shape):   # layer-invariant block
        return pl.BlockSpec(shape, lambda l: (0,) * len(shape))

    in_specs = [
        cspec((M, D)),          # initial activations (padded (G*S, D) layout)
        cspec((1, D)),          # CLS token
        cspec((M, 1)),          # is-CLS row mask (f32 0/1)
        cspec((M, M)),          # block-diagonal additive attention mask
        wspec((D, 3 * D)), wspec((1, 3 * D)),     # in_proj (packed QKV)
        wspec((D, D)), wspec((1, D)),             # out_proj
        wspec((1, D)), wspec((1, D)),             # ln1
        wspec((D, 4 * D)), wspec((1, 4 * D)),     # ffn linear1
        wspec((4 * D, D)), wspec((1, D)),         # ffn linear2
        wspec((1, D)), wspec((1, D)),             # ln2
    ]
    # TODO(synk): for large G*S / D, split the batch over a "parallel" grid axis
    # (v7x megacore) and set vmem_limit_bytes explicitly; unnecessary at these sizes.
    return pl.pallas_call(
        kernel,
        out_shape=jax.ShapeDtypeStruct((M, D), jnp.float32),
        grid=(L,),
        in_specs=in_specs,
        out_specs=cspec((M, D)),
        scratch_shapes=[pltpu.VMEM((M, D), jnp.float32)],   # head-concat scratch
        compiler_params=pltpu.CompilerParams(
            dimension_semantics=("arbitrary",)),             # layers are sequential
    )


def _head_kernel(u_ref, u1w_ref, u1b_ref, u2w_ref, u2b_ref,
                 f1w_ref, f1b_ref, f2w_ref, f2b_ref, o_ref, *, slope):
    """u_mlp (Linear-ReLU-Linear) + feature decoder (Linear-LeakyReLU-Linear)."""
    u = u_ref[...]
    h = jnp.maximum(_mm(u, u1w_ref[...]) + u1b_ref[...], 0.0)
    up = _mm(h, u2w_ref[...]) + u2b_ref[...]
    g = _mm(up, f1w_ref[...]) + f1b_ref[...]
    g = jnp.where(g >= 0.0, g, slope * g)
    o_ref[...] = _mm(g, f2w_ref[...]) + f2b_ref[...]     # lane-dense (128-wide) out


@lru_cache(maxsize=None)
def _head_call(M, D, Fp, slope):
    kernel = partial(_head_kernel, slope=slope)
    return pl.pallas_call(
        kernel,
        out_shape=jax.ShapeDtypeStruct((M, Fp), jnp.float32),
        grid=(1,),
        in_specs=[_fs((M, D)),
                  _fs((D, D)), _fs((1, D)), _fs((D, D)), _fs((1, D)),
                  _fs((D, D // 2)), _fs((1, D // 2)),
                  _fs((D // 2, Fp)), _fs((1, Fp))],
        out_specs=_fs((M, Fp)),
    )


# ----------------------------------------------------------------------------
# Host-side graph preprocessing (glue — mirrors networkx / scipy / PyG utils)
# ----------------------------------------------------------------------------

def build_gcn_adj(edge_index, n):
    """Dense symmetric-normalized adjacency with self loops (GCN propagation)."""
    ei = np.concatenate([edge_index, np.stack([np.arange(n), np.arange(n)])], axis=1)
    deg = np.bincount(ei[0], minlength=n).astype(np.float32)
    dinv = np.where(deg > 0, deg ** -0.5, 0.0).astype(np.float32)
    A = np.zeros((n, n), dtype=np.float32)
    A[ei[1], ei[0]] = dinv[ei[0]] * dinv[ei[1]]
    return A


def wsp_matrix(e_loc, n, max_nodes):
    """All-pairs shortest path lengths (unreachable -> max_nodes), padded to max_nodes cols."""
    INF = 1e9
    dist = np.full((n, n), INF, dtype=np.float64)
    np.fill_diagonal(dist, 0.0)
    for u, v in zip(e_loc[0], e_loc[1]):
        dist[u, v] = 1.0
    for k in range(n):  # Floyd-Warshall (replaces networkx shortest_path_length)
        dist = np.minimum(dist, dist[:, k:k + 1] + dist[k:k + 1, :])
    d = np.where(dist >= INF, float(max_nodes), dist)
    np.fill_diagonal(d, 0.0)
    spl = np.zeros((n, max_nodes), dtype=np.float32)
    spl[:, :n] = d
    return spl


def laplacian_eigvecs(e_loc, n, max_nodes):
    """Eigenvectors of the sym-normalized Laplacian, padded to max_nodes cols."""
    A = np.zeros((n, n), dtype=np.float64)
    A[e_loc[0], e_loc[1]] = 1.0
    deg = A.sum(axis=1)
    dinv = np.where(deg > 0, deg ** -0.5, 0.0)
    L = np.eye(n) - dinv[:, None] * A * dinv[None, :]
    _, vecs = np.linalg.eigh(L)   # replaces scipy.linalg.eigh
    out = np.zeros((n, max_nodes), dtype=np.float32)
    out[:, :n] = vecs.astype(np.float32)
    return out


# ----------------------------------------------------------------------------
# Forward pass (inference path of GRAPH_AUTOENCODER)
# ----------------------------------------------------------------------------

def graph_autoencoder_forward(params, x, edge_index_global, edges_local, graph_sizes,
                              max_nodes, nhead_bert, nhead):
    N, Fin = x.shape
    D = params["bert_cls"].shape[-1]
    G = len(graph_sizes)
    offs = np.cumsum([0] + list(graph_sizes))
    max_n = max(graph_sizes)
    S = _round_up(max_n + 1, 8)          # CLS + nodes, padded to full sublanes
    M = G * S
    N_pad = _round_up(N, 8)
    slope = 0.1

    # ---- host-side graph preprocessing (numpy, mirrors networkx/scipy glue) ----
    A = build_gcn_adj(edge_index_global, N)
    A_pad = np.zeros((N_pad, N_pad), np.float32); A_pad[:N, :N] = A
    x_pad = np.zeros((N_pad, Fin), np.float32);   x_pad[:N] = np.asarray(x)

    pe_rows = []
    for gi, n in enumerate(graph_sizes):
        loc = []
        for (u, v) in edges_local[gi]:
            loc.append((u, v)); loc.append((v, u))
        e_loc = np.array(loc, dtype=np.int64).T
        pe_rows.append(np.concatenate([wsp_matrix(e_loc, n, max_nodes),
                                       laplacian_eigvecs(e_loc, n, max_nodes)], axis=1))
    pe_in = np.zeros((N_pad, 2 * max_nodes), np.float32)
    pe_in[:N] = np.concatenate(pe_rows, axis=0)

    # padded (G*S) sequence-layout bookkeeping + block-diagonal attention mask
    pad_src = np.zeros((M,), np.int32)
    pad_valid = np.zeros((M, 1), np.float32)
    is_cls = np.zeros((M, 1), np.float32)
    node_rows = np.zeros((N,), np.int32)
    cls_rows = np.array([g * S for g in range(G)], np.int32)
    attn_mask = np.full((M, M), -1e9, np.float32)
    for g, n in enumerate(graph_sizes):
        is_cls[g * S, 0] = 1.0
        attn_mask[g * S:(g + 1) * S, g * S:g * S + 1 + n] = 0.0   # CLS + real keys only
        for j in range(n):
            r = g * S + 1 + j
            pad_src[r] = offs[g] + j
            pad_valid[r, 0] = 1.0
            node_rows[offs[g] + j] = r

    # ---- 1 fused kernel: GCN residual stack + L2-normalize + positional enc ----
    block_dims, gcn_args = [], []
    for p in params["gcn_blocks"]:
        ci, co = p["conv_w"].shape
        has_sc = p["short_w"] is not None
        block_dims.append((int(ci), int(co), bool(has_sc)))
        gcn_args += [p["conv_w"], p["conv_b"], p["bn_scale"], p["bn_bias"]]
        if has_sc:
            gcn_args += [p["short_w"], p["short_b"]]
    z = _gcn_stack_call(N_pad, Fin, tuple(block_dims), 2 * max_nodes, D, slope)(
        jnp.asarray(x_pad),
        jnp.asarray(A_pad).astype(MM_DTYPE),
        jnp.asarray(pe_in).astype(MM_DTYPE),
        params["pe_w"], params["pe_b"],
        *gcn_args)

    # scatter packed node rows into the padded per-graph layout (one gather + mask)
    z_seq = jnp.take(z, jnp.asarray(pad_src), axis=0) * jnp.asarray(pad_valid)
    mask_j = jnp.asarray(attn_mask)
    iscls_j = jnp.asarray(is_cls)

    # ---- BERT encoder transformer stack: one fused kernel (gelu) ----------------
    bp = params["bert"]
    enc = _tstack_call(M, D, int(bp["w_in"].shape[0]), nhead_bert, "gelu")(
        z_seq, params["bert_cls"], iscls_j, mask_j,
        bp["w_in"], bp["b_in"], bp["w_out"], bp["b_out"],
        bp["ln1_g"], bp["ln1_b"], bp["w1"], bp["b1"], bp["w2"], bp["b2"],
        bp["ln2_g"], bp["ln2_b"])

    # ---- decoder transformer stack (padded layout reused, CLS swapped in-kernel) -
    dp = params["dec"]
    dec = _tstack_call(M, D, int(dp["w_in"].shape[0]), nhead, "relu")(
        enc, params["ae_cls"], iscls_j, mask_j,
        dp["w_in"], dp["b_in"], dp["w_out"], dp["b_out"],
        dp["ln1_g"], dp["ln1_b"], dp["w1"], dp["b1"], dp["w2"], dp["b2"],
        dp["ln2_g"], dp["ln2_b"])

    cls_output = jnp.take(dec, jnp.asarray(cls_rows), axis=0)        # (G, D)

    # ---- fused u_mlp + feature decoder on the whole padded slab -----------------
    recon_full = _head_call(M, D, int(params["f2_w"].shape[1]), slope)(
        dec, params["u1_w"], params["u1_b"], params["u2_w"], params["u2_b"],
        params["f1_w"], params["f1_b"], params["f2_w"], params["f2_b"])
    x_recon = jnp.take(recon_full, jnp.asarray(node_rows), axis=0)[:, :Fin]
    return cls_output, x_recon


# ----------------------------------------------------------------------------
# Deterministic parameter initialization (shapes from the module's __init__)
# ----------------------------------------------------------------------------

def init_params(key, num_features, hidden_dims, max_nodes, nl_bert, nl, bn_eps=1e-5):
    keys = iter(jax.random.split(key, 128))

    def xavier(shape, dtype=MM_DTYPE):
        fi, fo = shape[-2], shape[-1]
        lim = math.sqrt(6.0 / (fi + fo))
        return jax.random.uniform(next(keys), shape, jnp.float32, -lim, lim).astype(dtype)

    D = hidden_dims[-1]
    dims = [num_features] + list(hidden_dims)
    # BatchNorm1d eval mode (running_mean=0, running_var=1): fold 1/sqrt(1+eps) into gamma.
    bn_inv = 1.0 / math.sqrt(1.0 + bn_eps)
    blocks = []
    for i in range(len(dims) - 1):
        ci, co = dims[i], dims[i + 1]
        blocks.append(dict(
            conv_w=xavier((ci, co)),
            conv_b=jnp.zeros((1, co), jnp.float32),
            short_w=xavier((ci, co)) if ci != co else None,
            short_b=jnp.zeros((1, co), jnp.float32),
            bn_scale=jnp.full((1, co), bn_inv, jnp.float32),
            bn_bias=jnp.zeros((1, co), jnp.float32)))

    def tstack(L):
        return dict(
            w_in=xavier((L, D, 3 * D)), b_in=jnp.zeros((L, 1, 3 * D), jnp.float32),
            w_out=xavier((L, D, D)), b_out=jnp.zeros((L, 1, D), jnp.float32),
            w1=xavier((L, D, 4 * D)), b1=jnp.zeros((L, 1, 4 * D), jnp.float32),
            w2=xavier((L, 4 * D, D)), b2=jnp.zeros((L, 1, D), jnp.float32),
            ln1_g=jnp.ones((L, 1, D), jnp.float32), ln1_b=jnp.zeros((L, 1, D), jnp.float32),
            ln2_g=jnp.ones((L, 1, D), jnp.float32), ln2_b=jnp.zeros((L, 1, D), jnp.float32))

    # block-diagonal positional-encoding weight: out[:, :D/2]=wsp@Wwsp, out[:, D/2:]=lev@Wle
    wsp_w = xavier((max_nodes, D // 2), jnp.float32)
    le_w = xavier((max_nodes, D // 2), jnp.float32)
    pe_w = jnp.zeros((2 * max_nodes, D), jnp.float32)
    pe_w = pe_w.at[:max_nodes, :D // 2].set(wsp_w)
    pe_w = pe_w.at[max_nodes:, D // 2:].set(le_w).astype(MM_DTYPE)

    # feature-decoder output weight zero-padded to a lane-dense 128-wide output
    f2_w = jnp.zeros((D // 2, F_LANE_PAD), jnp.float32)
    f2_w = f2_w.at[:, :num_features].set(
        xavier((D // 2, num_features), jnp.float32)).astype(MM_DTYPE)

    return dict(
        gcn_blocks=blocks,
        pe_w=pe_w, pe_b=jnp.zeros((1, D), jnp.float32),
        bert=tstack(nl_bert),
        bert_cls=0.02 * jax.random.normal(next(keys), (1, D), jnp.float32),
        dec=tstack(nl),
        ae_cls=0.02 * jax.random.normal(next(keys), (1, D), jnp.float32),
        u1_w=xavier((D, D)), u1_b=jnp.zeros((1, D), jnp.float32),
        u2_w=xavier((D, D)), u2_b=jnp.zeros((1, D), jnp.float32),
        f1_w=xavier((D, D // 2)), f1_b=jnp.zeros((1, D // 2), jnp.float32),
        f2_w=f2_w, f2_b=jnp.zeros((1, F_LANE_PAD), jnp.float32),
    )


# ----------------------------------------------------------------------------

if __name__ == "__main__":
    num_features = 4
    hidden_dims = [16, 32]
    max_nodes = 16
    nhead_BERT, nhead = 2, 2
    num_layers_BERT, num_layers = 1, 1

    # two small graphs: a 5-cycle and a 7-cycle
    graph_sizes = [5, 7]
    edges_local = [
        [(0, 1), (1, 2), (2, 3), (3, 4), (4, 0)],
        [(0, 1), (1, 2), (2, 3), (3, 4), (4, 5), (5, 6), (6, 0)],
    ]
    rows, cols = [], []
    off = 0
    for gi, edges in enumerate(edges_local):
        for (u, v) in edges:
            rows += [u + off, v + off]
            cols += [v + off, u + off]
        off += graph_sizes[gi]
    edge_index = np.array([rows, cols], dtype=np.int64)   # (2, 24), both directions

    key = jax.random.PRNGKey(0)
    kx, kp = jax.random.split(key)
    x = jax.random.normal(kx, (sum(graph_sizes), num_features), jnp.float32)
    params = init_params(kp, num_features, hidden_dims, max_nodes,
                         num_layers_BERT, num_layers)

    cls_out, x_recon = graph_autoencoder_forward(
        params, x, edge_index, edges_local, graph_sizes,
        max_nodes, nhead_BERT, nhead)
    jax.block_until_ready((cls_out, x_recon))

    assert cls_out.shape == (len(graph_sizes), hidden_dims[-1])
    assert x_recon.shape == (sum(graph_sizes), num_features)
    assert bool(jnp.all(jnp.isfinite(cls_out))) and bool(jnp.all(jnp.isfinite(x_recon)))
    # TODO(synk): training-mode branches (mask_token insertion, masked_outputs,
    # BilinearEdgeDecoder adjacency reconstruction) are not exercised in the
    # inference path implemented here.
    print("KERNEL_OK")
</pallas_src>

<mosaic_0001>
module attributes {stable_mosaic.version = 11 : i64} {
  func.func @kernel(%arg0: i32, %arg1: memref<16x4xf32, #tpu.memory_space<vmem>>, %arg2: memref<16x16xbf16, #tpu.memory_space<vmem>>, %arg3: memref<16x32xbf16, #tpu.memory_space<vmem>>, %arg4: memref<32x32xbf16, #tpu.memory_space<vmem>>, %arg5: memref<1x32xf32, #tpu.memory_space<vmem>>, %arg6: memref<4x16xbf16, #tpu.memory_space<vmem>>, %arg7: memref<1x16xf32, #tpu.memory_space<vmem>>, %arg8: memref<1x16xf32, #tpu.memory_space<vmem>>, %arg9: memref<1x16xf32, #tpu.memory_space<vmem>>, %arg10: memref<4x16xbf16, #tpu.memory_space<vmem>>, %arg11: memref<1x16xf32, #tpu.memory_space<vmem>>, %arg12: memref<16x32xbf16, #tpu.memory_space<vmem>>, %arg13: memref<1x32xf32, #tpu.memory_space<vmem>>, %arg14: memref<1x32xf32, #tpu.memory_space<vmem>>, %arg15: memref<1x32xf32, #tpu.memory_space<vmem>>, %arg16: memref<16x32xbf16, #tpu.memory_space<vmem>>, %arg17: memref<1x32xf32, #tpu.memory_space<vmem>>, %arg18: memref<16x32xf32, #tpu.memory_space<vmem>>) attributes {dimension_semantics = [#tpu.dimension_semantics<arbitrary>], iteration_bounds = array<i64: 1>, scalar_prefetch = 0 : i64, scratch_operands = 0 : i64, tpu.core_type = #tpu.core_type<tc>, window_params = [{pipeline_mode = #tpu.pipeline_mode<synchronous>, transform_indices = @transform_0, window_bounds = array<i64: 16, 4>}, {pipeline_mode = #tpu.pipeline_mode<synchronous>, transform_indices = @transform_1, window_bounds = array<i64: 16, 16>}, {pipeline_mode = #tpu.pipeline_mode<synchronous>, transform_indices = @transform_2, window_bounds = array<i64: 16, 32>}, {pipeline_mode = #tpu.pipeline_mode<synchronous>, transform_indices = @transform_3, window_bounds = array<i64: 32, 32>}, {pipeline_mode = #tpu.pipeline_mode<synchronous>, transform_indices = @transform_4, window_bounds = array<i64: 1, 32>}, {pipeline_mode = #tpu.pipeline_mode<synchronous>, transform_indices = @transform_5, window_bounds = array<i64: 4, 16>}, {pipeline_mode = #tpu.pipeline_mode<synchronous>, transform_indices = @transform_6, window_bounds = array<i64: 1, 16>}, {pipeline_mode = #tpu.pipeline_mode<synchronous>, transform_indices = @transform_7, window_bounds = array<i64: 1, 16>}, {pipeline_mode = #tpu.pipeline_mode<synchronous>, transform_indices = @transform_8, window_bounds = array<i64: 1, 16>}, {pipeline_mode = #tpu.pipeline_mode<synchronous>, transform_indices = @transform_9, window_bounds = array<i64: 4, 16>}, {pipeline_mode = #tpu.pipeline_mode<synchronous>, transform_indices = @transform_10, window_bounds = array<i64: 1, 16>}, {pipeline_mode = #tpu.pipeline_mode<synchronous>, transform_indices = @transform_11, window_bounds = array<i64: 16, 32>}, {pipeline_mode = #tpu.pipeline_mode<synchronous>, transform_indices = @transform_12, window_bounds = array<i64: 1, 32>}, {pipeline_mode = #tpu.pipeline_mode<synchronous>, transform_indices = @transform_13, window_bounds = array<i64: 1, 32>}, {pipeline_mode = #tpu.pipeline_mode<synchronous>, transform_indices = @transform_14, window_bounds = array<i64: 1, 32>}, {pipeline_mode = #tpu.pipeline_mode<synchronous>, transform_indices = @transform_15, window_bounds = array<i64: 16, 32>}, {pipeline_mode = #tpu.pipeline_mode<synchronous>, transform_indices = @transform_16, window_bounds = array<i64: 1, 32>}, {pipeline_mode = #tpu.pipeline_mode<synchronous>, transform_indices = @transform_17, window_bounds = array<i64: 16, 32>}]} {
    %c0 = arith.constant 0 : index
    %c0_0 = arith.constant 0 : index
    %0 = vector.load %arg2[%c0, %c0_0] : memref<16x16xbf16, #tpu.memory_space<vmem>>, vector<16x16xbf16>
    %c0_1 = arith.constant 0 : index
    %c0_2 = arith.constant 0 : index
    %1 = vector.load %arg1[%c0_1, %c0_2] : memref<16x4xf32, #tpu.memory_space<vmem>>, vector<16x4xf32>
    %c0_3 = arith.constant 0 : index
    %c0_4 = arith.constant 0 : index
    %2 = vector.load %arg10[%c0_3, %c0_4] : memref<4x16xbf16, #tpu.memory_space<vmem>>, vector<4x16xbf16>
    %3 = arith.truncf %1 : vector<16x4xf32> to vector<16x4xbf16>
    %cst = arith.constant dense<0.000000e+00> : vector<16x16xf32>
    %4 = tpu.matmul %3, %2, %cst {dimension_numbers = #tpu.dot_dimension_numbers<[1], [0], [0], [1], [0, 0, 1, 1], [], []>} : vector<16x4xbf16>, vector<4x16xbf16>, vector<16x16xf32> -> vector<16x16xf32>
    %c0_5 = arith.constant 0 : index
    %c0_6 = arith.constant 0 : index
    %5 = vector.load %arg11[%c0_5, %c0_6] : memref<1x16xf32, #tpu.memory_space<vmem>>, vector<1x16xf32>
    %6 = vector.broadcast %5 : vector<1x16xf32> to vector<16x16xf32>
    %7 = arith.addf %4, %6 : vector<16x16xf32>
    %c0_7 = arith.constant 0 : index
    %c0_8 = arith.constant 0 : index
    %8 = vector.load %arg6[%c0_7, %c0_8] : memref<4x16xbf16, #tpu.memory_space<vmem>>, vector<4x16xbf16>
    %9 = arith.truncf %1 : vector<16x4xf32> to vector<16x4xbf16>
    %cst_9 = arith.constant dense<0.000000e+00> : vector<16x16xf32>
    %10 = tpu.matmul %9, %8, %cst_9 {dimension_numbers = #tpu.dot_dimension_numbers<[1], [0], [0], [1], [0, 0, 1, 1], [], []>} : vector<16x4xbf16>, vector<4x16xbf16>, vector<16x16xf32> -> vector<16x16xf32>
    %11 = arith.truncf %10 : vector<16x16xf32> to vector<16x16xbf16>
    %cst_10 = arith.constant dense<0.000000e+00> : vector<16x16xf32>
    %12 = tpu.matmul %0, %11, %cst_10 {dimension_numbers = #tpu.dot_dimension_numbers<[1], [0], [0], [1], [0, 0, 1, 1], [], []>} : vector<16x16xbf16>, vector<16x16xbf16>, vector<16x16xf32> -> vector<16x16xf32>
    %c0_11 = arith.constant 0 : index
    %c0_12 = arith.constant 0 : index
    %13 = vector.load %arg7[%c0_11, %c0_12] : memref<1x16xf32, #tpu.memory_space<vmem>>, vector<1x16xf32>
    %14 = vector.broadcast %13 : vector<1x16xf32> to vector<16x16xf32>
    %15 = arith.addf %12, %14 : vector<16x16xf32>
    %c0_13 = arith.constant 0 : index
    %c0_14 = arith.constant 0 : index
    %16 = vector.load %arg8[%c0_13, %c0_14] : memref<1x16xf32, #tpu.memory_space<vmem>>, vector<1x16xf32>
    %17 = vector.broadcast %16 : vector<1x16xf32> to vector<16x16xf32>
    %18 = arith.mulf %15, %17 : vector<16x16xf32>
    %c0_15 = arith.constant 0 : index
    %c0_16 = arith.constant 0 : index
    %19 = vector.load %arg9[%c0_15, %c0_16] : memref<1x16xf32, #tpu.memory_space<vmem>>, vector<1x16xf32>
    %20 = vector.broadcast %19 : vector<1x16xf32> to vector<16x16xf32>
    %21 = arith.addf %18, %20 : vector<16x16xf32>
    %cst_17 = arith.constant 0.000000e+00 : f32
    %22 = vector.broadcast %cst_17 : f32 to vector<16x16xf32>
    %23 = arith.cmpf oge, %21, %22 : vector<16x16xf32>
    %cst_18 = arith.constant 1.000000e-01 : f32
    %24 = vector.broadcast %cst_18 : f32 to vector<16x16xf32>
    %25 = arith.mulf %24, %21 : vector<16x16xf32>
    %26 = arith.select %23, %21, %25 : vector<16x16xi1>, vector<16x16xf32>
    %27 = arith.addf %26, %7 : vector<16x16xf32>
    %cst_19 = arith.constant 0.000000e+00 : f32
    %28 = vector.broadcast %cst_19 : f32 to vector<16x16xf32>
    %29 = arith.cmpf oge, %27, %28 : vector<16x16xf32>
    %cst_20 = arith.constant 1.000000e-01 : f32
    %30 = vector.broadcast %cst_20 : f32 to vector<16x16xf32>
    %31 = arith.mulf %30, %27 : vector<16x16xf32>
    %32 = arith.select %29, %27, %31 : vector<16x16xi1>, vector<16x16xf32>
    %c0_21 = arith.constant 0 : index
    %c0_22 = arith.constant 0 : index
    %33 = vector.load %arg16[%c0_21, %c0_22] : memref<16x32xbf16, #tpu.memory_space<vmem>>, vector<16x32xbf16>
    %34 = arith.truncf %32 : vector<16x16xf32> to vector<16x16xbf16>
    %cst_23 = arith.constant dense<0.000000e+00> : vector<16x32xf32>
    %35 = tpu.matmul %34, %33, %cst_23 {dimension_numbers = #tpu.dot_dimension_numbers<[1], [0], [0], [1], [0, 0, 1, 1], [], []>} : vector<16x16xbf16>, vector<16x32xbf16>, vector<16x32xf32> -> vector<16x32xf32>
    %c0_24 = arith.constant 0 : index
    %c0_25 = arith.constant 0 : index
    %36 = vector.load %arg17[%c0_24, %c0_25] : memref<1x32xf32, #tpu.memory_space<vmem>>, vector<1x32xf32>
    %37 = vector.broadcast %36 : vector<1x32xf32> to vector<16x32xf32>
    %38 = arith.addf %35, %37 : vector<16x32xf32>
    %c0_26 = arith.constant 0 : index
    %c0_27 = arith.constant 0 : index
    %39 = vector.load %arg12[%c0_26, %c0_27] : memref<16x32xbf16, #tpu.memory_space<vmem>>, vector<16x32xbf16>
    %40 = arith.truncf %32 : vector<16x16xf32> to vector<16x16xbf16>
    %cst_28 = arith.constant dense<0.000000e+00> : vector<16x32xf32>
    %41 = tpu.matmul %40, %39, %cst_28 {dimension_numbers = #tpu.dot_dimension_numbers<[1], [0], [0], [1], [0, 0, 1, 1], [], []>} : vector<16x16xbf16>, vector<16x32xbf16>, vector<16x32xf32> -> vector<16x32xf32>
    %42 = arith.truncf %41 : vector<16x32xf32> to vector<16x32xbf16>
    %cst_29 = arith.constant dense<0.000000e+00> : vector<16x32xf32>
    %43 = tpu.matmul %0, %42, %cst_29 {dimension_numbers = #tpu.dot_dimension_numbers<[1], [0], [0], [1], [0, 0, 1, 1], [], []>} : vector<16x16xbf16>, vector<16x32xbf16>, vector<16x32xf32> -> vector<16x32xf32>
    %c0_30 = arith.constant 0 : index
    %c0_31 = arith.constant 0 : index
    %44 = vector.load %arg13[%c0_30, %c0_31] : memref<1x32xf32, #tpu.memory_space<vmem>>, vector<1x32xf32>
    %45 = vector.broadcast %44 : vector<1x32xf32> to vector<16x32xf32>
    %46 = arith.addf %43, %45 : vector<16x32xf32>
    %c0_32 = arith.constant 0 : index
    %c0_33 = arith.constant 0 : index
    %47 = vector.load %arg14[%c0_32, %c0_33] : memref<1x32xf32, #tpu.memory_space<vmem>>, vector<1x32xf32>
    %48 = vector.broadcast %47 : vector<1x32xf32> to vector<16x32xf32>
    %49 = arith.mulf %46, %48 : vector<16x32xf32>
    %c0_34 = arith.constant 0 : index
    %c0_35 = arith.constant 0 : index
    %50 = vector.load %arg15[%c0_34, %c0_35] : memref<1x32xf32, #tpu.memory_space<vmem>>, vector<1x32xf32>
    %51 = vector.broadcast %50 : vector<1x32xf32> to vector<16x32xf32>
    %52 = arith.addf %49, %51 : vector<16x32xf32>
    %cst_36 = arith.constant 0.000000e+00 : f32
    %53 = vector.broadcast %cst_36 : f32 to vector<16x32xf32>
    %54 = arith.cmpf oge, %52, %53 : vector<16x32xf32>
    %cst_37 = arith.constant 1.000000e-01 : f32
    %55 = vector.broadcast %cst_37 : f32 to vector<16x32xf32>
    %56 = arith.mulf %55, %52 : vector<16x32xf32>
    %57 = arith.select %54, %52, %56 : vector<16x32xi1>, vector<16x32xf32>
    %58 = arith.addf %57, %38 : vector<16x32xf32>
    %cst_38 = arith.constant 0.000000e+00 : f32
    %59 = vector.broadcast %cst_38 : f32 to vector<16x32xf32>
    %60 = arith.cmpf oge, %58, %59 : vector<16x32xf32>
    %cst_39 = arith.constant 1.000000e-01 : f32
    %61 = vector.broadcast %cst_39 : f32 to vector<16x32xf32>
    %62 = arith.mulf %61, %58 : vector<16x32xf32>
    %63 = arith.select %60, %58, %62 : vector<16x32xi1>, vector<16x32xf32>
    %64 = arith.mulf %63, %63 : vector<16x32xf32>
    %cst_40 = arith.constant dense<0.000000e+00> : vector<16xf32>
    %65 = vector.multi_reduction <add>, %64, %cst_40 [1] : vector<16x32xf32> to vector<16xf32>
    %66 = vector.shape_cast %65 : vector<16xf32> to vector<16x1xf32>
    %67 = math.sqrt %66 : vector<16x1xf32>
    %cst_41 = arith.constant 9.99999996E-13 : f32
    %68 = vector.broadcast %cst_41 : f32 to vector<16x1xf32>
    %69 = arith.maximumf %67, %68 : vector<16x1xf32>
    %70 = vector.broadcast %69 : vector<16x1xf32> to vector<16x32xf32>
    %71 = arith.divf %63, %70 : vector<16x32xf32>
    %c0_42 = arith.constant 0 : index
    %c0_43 = arith.constant 0 : index
    %72 = vector.load %arg3[%c0_42, %c0_43] : memref<16x32xbf16, #tpu.memory_space<vmem>>, vector<16x32xbf16>
    %c0_44 = arith.constant 0 : index
    %c0_45 = arith.constant 0 : index
    %73 = vector.load %arg4[%c0_44, %c0_45] : memref<32x32xbf16, #tpu.memory_space<vmem>>, vector<32x32xbf16>
    %cst_46 = arith.constant dense<0.000000e+00> : vector<16x32xf32>
    %74 = tpu.matmul %72, %73, %cst_46 {dimension_numbers = #tpu.dot_dimension_numbers<[1], [0], [0], [1], [0, 0, 1, 1], [], []>} : vector<16x32xbf16>, vector<32x32xbf16>, vector<16x32xf32> -> vector<16x32xf32>
    %c0_47 = arith.constant 0 : index
    %c0_48 = arith.constant 0 : index
    %75 = vector.load %arg5[%c0_47, %c0_48] : memref<1x32xf32, #tpu.memory_space<vmem>>, vector<1x32xf32>
    %76 = vector.broadcast %75 : vector<1x32xf32> to vector<16x32xf32>
    %77 = arith.addf %74, %76 : vector<16x32xf32>
    %78 = arith.addf %71, %77 : vector<16x32xf32>
    %c0_49 = arith.constant 0 : index
    %c0_50 = arith.constant 0 : index
    %79 = vector.load %arg18[%c0_49, %c0_50] : memref<16x32xf32, #tpu.memory_space<vmem>>, vector<16x32xf32>
    tpu.vector_store %arg18[%c0_49, %c0_50], %78 {strides = array<i32>} : memref<16x32xf32, #tpu.memory_space<vmem>>, vector<16x32xf32>,
    return
  }
  func.func @transform_0(%arg0: i32) -> (i32, i32) {
    %c0_i32 = arith.constant 0 : i32
    %c0_i32_0 = arith.constant 0 : i32
    %c0_i32_1 = arith.constant 0 : i32
    return %c0_i32, %c0_i32_0 : i32, i32
  }
  func.func @transform_1(%arg0: i32) -> (i32, i32) {
    %c0_i32 = arith.constant 0 : i32
    %c0_i32_0 = arith.constant 0 : i32
    %c0_i32_1 = arith.constant 0 : i32
    return %c0_i32, %c0_i32_0 : i32, i32
  }
  func.func @transform_2(%arg0: i32) -> (i32, i32) {
    %c0_i32 = arith.constant 0 : i32
    %c0_i32_0 = arith.constant 0 : i32
    %c0_i32_1 = arith.constant 0 : i32
    return %c0_i32, %c0_i32_0 : i32, i32
  }
  func.func @transform_3(%arg0: i32) -> (i32, i32) {
    %c0_i32 = arith.constant 0 : i32
    %c0_i32_0 = arith.constant 0 : i32
    %c0_i32_1 = arith.constant 0 : i32
    return %c0_i32, %c0_i32_0 : i32, i32
  }
  func.func @transform_4(%arg0: i32) -> (i32, i32) {
    %c0_i32 = arith.constant 0 : i32
    %c0_i32_0 = arith.constant 0 : i32
    %c0_i32_1 = arith.constant 0 : i32
    return %c0_i32, %c0_i32_0 : i32, i32
  }
  func.func @transform_5(%arg0: i32) -> (i32, i32) {
    %c0_i32 = arith.constant 0 : i32
    %c0_i32_0 = arith.constant 0 : i32
    %c0_i32_1 = arith.constant 0 : i32
    return %c0_i32, %c0_i32_0 : i32, i32
  }
  func.func @transform_6(%arg0: i32) -> (i32, i32) {
    %c0_i32 = arith.constant 0 : i32
    %c0_i32_0 = arith.constant 0 : i32
    %c0_i32_1 = arith.constant 0 : i32
    return %c0_i32, %c0_i32_0 : i32, i32
  }
  func.func @transform_7(%arg0: i32) -> (i32, i32) {
    %c0_i32 = arith.constant 0 : i32
    %c0_i32_0 = arith.constant 0 : i32
    %c0_i32_1 = arith.constant 0 : i32
    return %c0_i32, %c0_i32_0 : i32, i32
  }
  func.func @transform_8(%arg0: i32) -> (i32, i32) {
    %c0_i32 = arith.constant 0 : i32
    %c0_i32_0 = arith.constant 0 : i32
    %c0_i32_1 = arith.constant 0 : i32
    return %c0_i32, %c0_i32_0 : i32, i32
  }
  func.func @transform_9(%arg0: i32) -> (i32, i32) {
    %c0_i32 = arith.constant 0 : i32
    %c0_i32_0 = arith.constant 0 : i32
    %c0_i32_1 = arith.constant 0 : i32
    return %c0_i32, %c0_i32_0 : i32, i32
  }
  func.func @transform_10(%arg0: i32) -> (i32, i32) {
    %c0_i32 = arith.constant 0 : i32
    %c0_i32_0 = arith.constant 0 : i32
    %c0_i32_1 = arith.constant 0 : i32
    return %c0_i32, %c0_i32_0 : i32, i32
  }
  func.func @transform_11(%arg0: i32) -> (i32, i32) {
    %c0_i32 = arith.constant 0 : i32
    %c0_i32_0 = arith.constant 0 : i32
    %c0_i32_1 = arith.constant 0 : i32
    return %c0_i32, %c0_i32_0 : i32, i32
  }
  func.func @transform_12(%arg0: i32) -> (i32, i32) {
    %c0_i32 = arith.constant 0 : i32
    %c0_i32_0 = arith.constant 0 : i32
    %c0_i32_1 = arith.constant 0 : i32
    return %c0_i32, %c0_i32_0 : i32, i32
  }
  func.func @transform_13(%arg0: i32) -> (i32, i32) {
    %c0_i32 = arith.constant 0 : i32
    %c0_i32_0 = arith.constant 0 : i32
    %c0_i32_1 = arith.constant 0 : i32
    return %c0_i32, %c0_i32_0 : i32, i32
  }
  func.func @transform_14(%arg0: i32) -> (i32, i32) {
    %c0_i32 = arith.constant 0 : i32
    %c0_i32_0 = arith.constant 0 : i32
    %c0_i32_1 = arith.constant 0 : i32
    return %c0_i32, %c0_i32_0 : i32, i32
  }
  func.func @transform_15(%arg0: i32) -> (i32, i32) {
    %c0_i32 = arith.constant 0 : i32
    %c0_i32_0 = arith.constant 0 : i32
    %c0_i32_1 = arith.constant 0 : i32
    return %c0_i32, %c0_i32_0 : i32, i32
  }
  func.func @transform_16(%arg0: i32) -> (i32, i32) {
    %c0_i32 = arith.constant 0 : i32
    %c0_i32_0 = arith.constant 0 : i32
    %c0_i32_1 = arith.constant 0 : i32
    return %c0_i32, %c0_i32_0 : i32, i32
  }
  func.func @transform_17(%arg0: i32) -> (i32, i32) {
    %c0_i32 = arith.constant 0 : i32
    %c0_i32_0 = arith.constant 0 : i32
    %c0_i32_1 = arith.constant 0 : i32
    return %c0_i32, %c0_i32_0 : i32, i32
  }
}

</mosaic_0001>

<bundles_post_ra>
// kernel: tpu_custom_call.1
= control target key start
LH: loop header
LB: loop body
LE: loop exit
PB: predicated region body
PF: predicated region fallthrough
CT: control target
= control target key end

     0   :  { %s1044_s0 = inlined_call_operand.vmem [shape: f32[16,4], index: 0, kind: input, shape index: {}]   ;;  %s1045_s1 = inlined_call_operand.vmem [shape: bf16[16,16], index: 1, kind: input, shape index: {}]   ;;  %s1046_s2 = inlined_call_operand.hbm [shape: bf16[16,32], index: 2, kind: input, shape index: {}]   ;;  %s1047_s3 = inlined_call_operand.vmem [shape: bf16[32,32], index: 3, kind: input, shape index: {}]   ;;  %s1048_s4 = inlined_call_operand.hbm [shape: f32[1,32], index: 4, kind: input, shape index: {}]   ;;  %s1049_s5 = inlined_call_operand.vmem [shape: bf16[4,16], index: 5, kind: input, shape index: {}]   ;;  %s1050_s6 = inlined_call_operand.hbm [shape: f32[1,16], index: 6, kind: input, shape index: {}]   ;;  %s1051_s7 = inlined_call_operand.vmem [shape: f32[1,16], index: 7, kind: input, shape index: {}]   ;;  %s1052_s8 = inlined_call_operand.vmem [shape: f32[1,16], index: 8, kind: input, shape index: {}]   ;;  %s1053_s9 = inlined_call_operand.vmem [shape: bf16[4,16], index: 9, kind: input, shape index: {}]   ;;  %s1054_s10 = inlined_call_operand.vmem [shape: f32[1,16], index: 10, kind: input, shape index: {}]   ;;  %s1055_s11 = inlined_call_operand.vmem [shape: bf16[16,32], index: 11, kind: input, shape index: {}]   ;;  %s1056_s12 = inlined_call_operand.vmem [shape: f32[1,32], index: 12, kind: input, shape index: {}]   ;;  %s1057_s13 = inlined_call_operand.vmem [shape: f32[1,32], index: 13, kind: input, shape index: {}]   ;;  %s1058_s14 = inlined_call_operand.vmem [shape: f32[1,32], index: 14, kind: input, shape index: {}]   ;;  %s1059_s15 = inlined_call_operand.vmem [shape: bf16[16,32], index: 15, kind: input, shape index: {}]   ;;  %s1060_s16 = inlined_call_operand.vmem [shape: f32[1,32], index: 16, kind: input, shape index: {}]   ;;  %s1061_s17 = inlined_call_operand.hbm [shape: f32[16,32], index: 17, kind: output, shape index: {}]  }
   0x1   :  { %1063 = sst [smem:[#allocation12_spill]] %s1044_s0 }
   0x2   :  { %1064 = sst [smem:[#allocation13_spill]] %s1045_s1 }
   0x3   :  { %22 = vsyncpa [#allocation3], 0 }
   0x4   :  { %23 = vsyncpa [#allocation6], 0 }
   0x5   :  { %24 = vsyncpa [#allocation4], 0  ;;  %s806_s24 = smov [#allocation5]   ;;  %s807_s26 = smov [#allocation2]  }
   0x6   :  { %s49_s25 = sshll.u32 %s806_s24, 4  ;;  %s34_s27 = sshll.u32 %s807_s26, 4  ;;  %s50_s25 = int_to_ptr.vmem [resolvable:$true] %s49_s25  ;;  %s906_s27 = int_to_ptr.vmem [resolvable:$true] %s34_s27 }
   0x7   :  { %s712_s0 = scalar_lea.hbm %s1048_s4, 16 }
   0x8   :  { %p713_p0 = scmp.ne.s32.totalorder %s1048_s4, %s712_s0  ;;  %p716_p1 = scmp.lt.u32.totalorder %s712_s0, %s1048_s4 }
   0xa   :  { %p718_p2 = pnand %p716_p1, %p713_p0 }
   0xc   :  { %721 = shalt.err (!%p718_p2)
}
   0xd   :  { %s722_s20 = scalar_lea.vmem %s50_s25, 16  ;;  %s726_s21 = scalar_lea.vmem %s50_s25, 32 }
   0xe   :  { %p723_p3 = scmp.ne.s32.totalorder %s50_s25, %s722_s20  ;;  %p727_p4 = scmp.lt.s32.totalorder %s50_s25, %s50_s25 }
   0xf   :  { %p728_p5 = scmp.lt.s32.totalorder %s726_s21, %s722_s20 }
  0x11   :  { %p729_p6 = por %p728_p5, %p727_p4 }
  0x13   :  { %p730_p7 = pnand %p729_p6, %p723_p3 }
  0x15   :  { %733 = shalt.err (!%p730_p7)
}
  0x16   :  { %52 = dma.hbm_to_vmem [thread:$0]  %s1048_s4, 16, %s50_s25, [#allocation6]  }
  0x17   :  { %s734_s28 = scalar_lea.hbm %s1046_s2, 128 }
  0x18   :  { %p735_p8 = scmp.ne.s32.totalorder %s1046_s2, %s734_s28  ;;  %p738_p9 = scmp.lt.u32.totalorder %s734_s28, %s1046_s2 }
  0x1a   :  { %p740_p10 = pnand %p738_p9, %p735_p8 }
  0x1c   :  { %743 = shalt.err (!%p740_p10)
}
  0x1d   :  { %s744_s19 = scalar_lea.vmem %s906_s27, 128  ;;  %p749_p12 = scmp.lt.s32.totalorder %s906_s27, %s906_s27 }
  0x1e   :  { %p745_p11 = scmp.ne.s32.totalorder %s906_s27, %s744_s19  ;;  %p750_p13 = scmp.lt.s32.totalorder %s744_s19, %s744_s19 }
  0x20   :  { %p751_p0 = por %p750_p13, %p749_p12 }
  0x22   :  { %p752_p1 = pnand %p751_p0, %p745_p11 }
  0x24   :  { %755 = shalt.err (!%p752_p1)
}
  0x25   :  { %s808_s4 = smov 64   ;;  %s809_s25 = smov 4  }
  0x26   :  { %40 = dma.hbm_to_vmem [thread:$0]  %s1046_s2, 128, %s906_s27, [#allocation3], %s808_s4, %s808_s4, %s809_s25  }
  0x27   :  { %s810_s21 = smov [#allocation7]   ;;  %s756_s26 = scalar_lea.hbm %s1050_s6, 16 }
  0x28   :  { %s61_s22 = sshll.u32 %s810_s21, 4  ;;  %p757_p2 = scmp.ne.s32.totalorder %s1050_s6, %s756_s26  ;;  %s62_s22 = int_to_ptr.vmem [resolvable:$true] %s61_s22 }
  0x29   :  { %p760_p3 = scmp.lt.u32.totalorder %s756_s26, %s1050_s6 }
  0x2b   :  { %p762_p4 = pnand %p760_p3, %p757_p2 }
  0x2d   :  { %765 = shalt.err (!%p762_p4)
}
  0x2e   :  { %s766_s18 = scalar_lea.vmem %s62_s22, 16  ;;  %s770_s2 = scalar_lea.vmem %s62_s22, 32 }
  0x2f   :  { %p767_p5 = scmp.ne.s32.totalorder %s62_s22, %s766_s18  ;;  %p771_p6 = scmp.lt.s32.totalorder %s62_s22, %s62_s22 }
  0x30   :  { %p772_p7 = scmp.lt.s32.totalorder %s770_s2, %s766_s18 }
  0x32   :  { %p773_p8 = por %p772_p7, %p771_p6 }
  0x34   :  { %p774_p9 = pnand %p773_p8, %p767_p5 }
  0x36   :  { %777 = shalt.err (!%p774_p9)
}
  0x37   :  { %64 = dma.hbm_to_vmem [thread:$0]  %s1050_s6, 16, %s62_s22, [#allocation6]  }
  0x38   :  { %800 = dma.done.wait [#allocation3], 128  }
  0x39   :  { %801 = vsyncadd [#allocation3], 4294967168 }
  0x3a   :  { %802 = dma.done.wait [#allocation6], 32  }
  0x3b   :  { %803 = vsyncadd [#allocation6], 4294967264  ;;  %v811_v0 = vmov 0.0   ;;  %vm812_vm0 = vmmov 0   ;;  %vm112_vm1 = vcmask 1041408   ;;  %s1065_s20 = sld [smem:[#allocation12_spill]] }
  0x3c   :  { %650 = vmatprep.subr.bf16.mxu1 %v811_v0  ;;  %652 = vmatprep.mubr.msk.bf16.mxu1 %vm812_vm0, %v811_v0  ;;  %v157_v1 = vld [vmem:[%s1049_s5] sm:$0x3]  ;;  %vm108_vm2 = vcmask 31744   ;;  %s1066_s26 = sld [smem:[#allocation13_spill]]  ;;  %vm215_vm3 = vcmask 130048   ;;  %v702_v48 = vld [vmem:[%s1047_s3 + $0x8] sm:$0xff]  }
  0x3d   :  { %644 = vmatprep.subr.bf16.mxu0 %v811_v0  ;;  %646 = vmatprep.mubr.msk.bf16.mxu0 %vm812_vm0, %v811_v0  ;;  %v159_v4 = vsel %vm112_vm1, %v157_v1, 0  ;;  %v99_v6 = vld [vmem:[%s1053_s9] sm:$0x3]  ;;  %v610_v20 = vld [vmem:[#allocation7] ss:$0 sm:$0xff]  ;;  %vm484_vm8 = vcmask 261120  }
  0x3e   :  { %651 = vmatpush3.bf16.msra.mxu1 %v159_v4  ;;  %v114_v7 = vsel %vm112_vm1, %v99_v6, 0  ;;  %v699_v18 = vld [vmem:[%s1059_s15] sm:$0xff]  }
  0x3f   :  { %645 = vmatpush3.bf16.msra.mxu0 %v114_v7  ;;  %662 = vmatprep.subr.bf16.mxu1 %v811_v0  ;;  %v700_v19 = vld [vmem:[%s1055_s11] sm:$0xff]  }
  0x40   :  { %656 = vmatprep.subr.bf16.mxu0 %v811_v0  ;;  %v613_v22 = vld [vmem:[%s1051_s7] ss:$0 sm:$0xff] }
  0x41   :  { %v97_v2 = vld [vmem:[%s1065_s20] sm:$0xff]  ;;  %v98_v3 = vld [vmem:[%s1065_s20 + $0x8] sm:$0xff] }
  0x42   :  { %v100_v5 = vpack.c.bf16 %v98_v3, %v97_v2  ;;  %v976_v16 = vld [vmem:[%s1066_s26] sm:$0xff]  }
  0x43   :  { %v614_v25 = vld [vmem:[%s1052_s8] ss:$0 sm:$0xff] }
  0x44   :  { %653 = vmatmul.mubr.msk.bf16.vlgmr.msra.gmra.mrb[0].mxu1 %vm108_vm2, %v100_v5  ;;  %647 = vmatmul.mubr.msk.bf16.vlgmr.msra.gmra.mrb[0].mxu0 %vm108_vm2, %v100_v5  ;;  %v607_v30 = vld [vmem:[%s1054_s10] ss:$0 sm:$0xff] }
  0x45   :  { %664 = vmatprep.mubr.msk.bf16.mxu1 %vm812_vm0, %v811_v0  ;;  %658 = vmatprep.mubr.msk.bf16.mxu0 %vm812_vm0, %v811_v0  ;;  %v701_v47 = vld [vmem:[%s1047_s3] sm:$0xff]  }
  0x46   :  { %663 = vmatpush3.bf16.msra.mxu1 %v699_v18  ;;  %v703_v49 = vld [vmem:[#allocation2] sm:$0xff]  }
  0x47   :  { %674 = vmatprep.subr.bf16.mxu1 %v811_v0  ;;  %v620_v59 = vld [vmem:[%s1056_s12] ss:$0 sm:$0xff]  ;;  %s813_s12 = smov [#allocation8]  }
  0x48   :  { %v622_v61 = vld [vmem:[%s1057_s13] ss:$0 sm:$0xff]  ;;  %s594_s13 = sshll.u32 %s813_s12, 4  ;;  %s595_s13 = int_to_ptr.vmem [resolvable:$true] %s594_s13 }
  0x49   :  { %v615_v5 = vld [vmem:[%s1060_s16] ss:$0 sm:$0xff]  ;;  %p783_p11 = scmp.lt.s32.totalorder %s595_s13, %s595_s13 }
 0x117   :  { %v195_v8 = vpop.f32.mrb[0].mxu1  ;;  %v150_v10 = vpop.f32.mrb[0].mxu0 }
 0x118   :  { %v654_v9 = vpop.f32.mrb[1].mxu1  ;;  %v648_v12 = vpop.f32.mrb[1].mxu0  ;;  %v151_v35 = vadd.f32 %v607_v30, %v150_v10 }
 0x119   :  { %v198_v11 = vpop.f32.mrb[2].mxu1  ;;  %v153_v15 = vpop.f32.mrb[2].mxu0 }
 0x11a   :  { %v202_v13 = vpack.c.bf16 %v198_v11, %v195_v8  ;;  %v655_v14 = vpop.f32.mrb[3].mxu1  ;;  %v649_v17 = vpop.f32.mrb[3].mxu0  ;;  %v154_v38 = vadd.f32 %v607_v30, %v153_v15 }
 0x11c   :  { %657 = vmatpush3.bf16.msra.mxu0 %v202_v13 }
 0x11d   :  { %668 = vmatprep.subr.bf16.mxu0 %v811_v0 }
 0x11f   :  { %659 = vmatmul.mubr.msk.bf16.vlgmr.msra.gmra.mrb[4].mxu0 %vm215_vm3, %v976_v16 }
 0x120   :  { %670 = vmatprep.mubr.msk.bf16.mxu0 %vm812_vm0, %v811_v0  ;;  %669 = vmatpush3.bf16.msra.mxu0 %v700_v19 }
 0x121   :  { %680 = vmatprep.subr.bf16.mxu0 %v811_v0 }
 0x1f2   :  { %v253_v21 = vpop.f32.mrb[4].mxu0 }
 0x1f3   :  { %v254_v23 = vadd.f32 %v610_v20, %v253_v21  ;;  %v660_v24 = vpop.f32.mrb[5].mxu0 }
 0x1f4   :  { %v256_v26 = vpop.f32.mrb[6].mxu0 }
 0x1f5   :  { %v267_v27 = vmul.f32 %v613_v22, %v254_v23  ;;  %v257_v28 = vadd.f32 %v610_v20, %v256_v26  ;;  %v661_v29 = vpop.f32.mrb[7].mxu0 }
 0x1f7   :  { %v276_v31 = vadd.f32 %v614_v25, %v267_v27  ;;  %v268_v32 = vmul.f32 %v613_v22, %v257_v28 }
 0x1f9   :  { %vm278_vm4 = vcmp.ge.f32.partialorder %v276_v31, 0.0  ;;  %v280_v33 = vmul.f32 0.1, %v276_v31  ;;  %v277_v34 = vadd.f32 %v614_v25, %v268_v32 }
 0x1fb   :  { %v282_v36 = vsel %vm278_vm4, %v276_v31, %v280_v33  ;;  %vm279_vm5 = vcmp.ge.f32.partialorder %v277_v34, 0.0  ;;  %v281_v37 = vmul.f32 0.1, %v277_v34 }
 0x1fc   :  { %v284_v39 = vadd.f32 %v282_v36, %v151_v35 }
 0x1fd   :  { %v283_v40 = vsel %vm279_vm5, %v277_v34, %v281_v37 }
 0x1fe   :  { %v288_v41 = vmul.f32 0.1, %v284_v39  ;;  %v285_v42 = vadd.f32 %v283_v40, %v154_v38  ;;  %vm286_vm6 = vcmp.ge.f32.partialorder %v284_v39, 0.0 }
 0x200   :  { %vm287_vm7 = vcmp.ge.f32.partialorder %v285_v42, 0.0  ;;  %v289_v43 = vmul.f32 0.1, %v285_v42  ;;  %v290_v44 = vsel %vm286_vm6, %v284_v39, %v288_v41 }
 0x202   :  { %v291_v45 = vsel %vm287_vm7, %v285_v42, %v289_v43  ;;  %v624_v43 = vld [vmem:[#allocation5] ss:$0 sm:$0xff] }
 0x203   :  { %v294_v46 = vpack.c.bf16 %v291_v45, %v290_v44 }
 0x205   :  { %665 = vmatmul.mubr.msk.bf16.vlgmr.msra.gmra.mrb[4].mxu1 %vm215_vm3, %v294_v46  ;;  %671 = vmatmul.mubr.msk.bf16.vlgmr.msra.gmra.mrb[8].mxu0 %vm215_vm3, %v294_v46 }
 0x206   :  { %676 = vmatprep.mubr.msk.bf16.mxu1 %vm812_vm0, %v811_v0  ;;  %684 = vmatprep.mubr.msk.bf16.mxu0 %vm812_vm0, %v811_v0 }
 0x207   :  { %681 = vmatpush3.bf16.msra.mxu0 %v701_v47 }
 0x208   :  { %682 = vmatprep.subr.bf16.mxu0 %v811_v0  ;;  %v623_v0 = vld [vmem:[%s1058_s14] ss:$0 sm:$0xff]  ;;  %s778_s14 = scalar_lea.vmem %s595_s13, 256 }
 0x209   :  { %p779_p10 = scmp.ne.s32.totalorder %s595_s13, %s778_s14  ;;  %p784_p12 = scmp.lt.s32.totalorder %s778_s14, %s778_s14 }
 0x20b   :  { %683 = vmatpush3.bf16.msra.mxu0 %v702_v48  ;;  %p785_p13 = por %p784_p12, %p783_p11 }
 0x20d   :  { %p786_p0 = pnand %p785_p13, %p779_p10 }
 0x20e   :  { %685 = vmatmul.mubr.msk.bf16.vlgmr.msra.gmra.mrb[12].mxu0 %vm484_vm8, %v703_v49 }
 0x2d8   :  { %v345_v50 = vpop.f32.mrb[4].mxu1  ;;  %v394_v51 = vpop.f32.mrb[8].mxu0 }
 0x2d9   :  { %v666_v52 = vpop.f32.mrb[5].mxu1  ;;  %v672_v53 = vpop.f32.mrb[9].mxu0  ;;  %v346_v10 = vadd.f32 %v615_v5, %v345_v50 }
 0x2da   :  { %v348_v54 = vpop.f32.mrb[6].mxu1  ;;  %v397_v55 = vpop.f32.mrb[10].mxu0 }
 0x2db   :  { %v401_v56 = vpack.c.bf16 %v397_v55, %v394_v51  ;;  %v667_v57 = vpop.f32.mrb[7].mxu1  ;;  %v673_v58 = vpop.f32.mrb[11].mxu0  ;;  %v349_v13 = vadd.f32 %v615_v5, %v348_v54 }
 0x2dd   :  { %675 = vmatpush3.bf16.msra.mxu1 %v401_v56 }
 0x2e0   :  { %677 = vmatmul.mubr.msk.bf16.vlgmr.msra.gmra.mrb[8].mxu1 %vm215_vm3, %v976_v16 }
 0x2e1   :  { %v578_v25 = vpop.f32.mrb[12].mxu0 }
 0x2e2   :  { %v686_v26 = vpop.f32.mrb[13].mxu0  ;;  %v579_v44 = vadd.f32 %v624_v43, %v578_v25 }
 0x2e3   :  { %v581_v27 = vpop.f32.mrb[14].mxu0 }
 0x2e4   :  { %v687_v28 = vpop.f32.mrb[15].mxu0  ;;  %v582_v50 = vadd.f32 %v624_v43, %v581_v27 }
 0x3b3   :  { %v443_v60 = vpop.f32.mrb[8].mxu1 }
 0x3b4   :  { %v444_v62 = vadd.f32 %v620_v59, %v443_v60  ;;  %v678_v63 = vpop.f32.mrb[9].mxu1 }
 0x3b5   :  { %v446_v1 = vpop.f32.mrb[10].mxu1 }
 0x3b6   :  { %v457_v2 = vmul.f32 %v622_v61, %v444_v62  ;;  %v447_v3 = vadd.f32 %v620_v59, %v446_v1  ;;  %v679_v4 = vpop.f32.mrb[11].mxu1 }
 0x3b8   :  { %v466_v6 = vadd.f32 %v623_v0, %v457_v2  ;;  %v458_v7 = vmul.f32 %v622_v61, %v447_v3 }
 0x3ba   :  { %vm468_vm9 = vcmp.ge.f32.partialorder %v466_v6, 0.0  ;;  %v470_v8 = vmul.f32 0.1, %v466_v6  ;;  %v467_v9 = vadd.f32 %v623_v0, %v458_v7 }
 0x3bc   :  { %vm469_vm10 = vcmp.ge.f32.partialorder %v467_v9, 0.0  ;;  %v471_v11 = vmul.f32 0.1, %v467_v9  ;;  %v472_v12 = vsel %vm468_vm9, %v466_v6, %v470_v8 }
 0x3bd   :  { %v474_v14 = vadd.f32 %v472_v12, %v346_v10 }
 0x3be   :  { %v473_v15 = vsel %vm469_vm10, %v467_v9, %v471_v11 }
 0x3bf   :  { %vm476_vm11 = vcmp.ge.f32.partialorder %v474_v14, 0.0  ;;  %v478_v16 = vmul.f32 0.1, %v474_v14  ;;  %v475_v17 = vadd.f32 %v473_v15, %v349_v13 }
 0x3c1   :  { %v480_v18 = vsel %vm476_vm11, %v474_v14, %v478_v16  ;;  %vm477_vm12 = vcmp.ge.f32.partialorder %v475_v17, 0.0  ;;  %v479_v19 = vmul.f32 0.1, %v475_v17 }
 0x3c2   :  { %v482_v20 = vmul.f32 %v480_v18, %v480_v18 }
 0x3c3   :  { %v481_v21 = vsel %vm477_vm12, %v475_v17, %v479_v19 }
 0x3c4   :  { %v485_v22 = vsel %vm484_vm8, %v482_v20, 0.0  ;;  %v483_v23 = vmul.f32 %v481_v21, %v481_v21 }
 0x3c5   :  { %486 = vadd.xlane.f32.xlu0 %v485_v22 }
 0x3c6   :  { %v488_v24 = vsel %vm484_vm8, %v483_v23, 0.0 }
 0x3c9   :  { %489 = vadd.xlane.f32.xlu0 %v488_v24 }
 0x452   :  { %v487_v29 = vpop.xlane.xlu0 %486 }
 0x453   :  { %704 = vrsqrt.f32 %v487_v29  ;;  %vm493_vm13 = vcmp.eq.f32.partialorder %v487_v29, inf  ;;  %v496_v33 = vand.u32 2147483648, %v487_v29  ;;  %vm495_vm14 = vcmp.eq.f32.partialorder %v487_v29, 0.0 }
 0x456   :  { %v490_v30 = vpop.xlane.xlu0 %489 }
 0x457   :  { %706 = vrsqrt.f32 %v490_v30  ;;  %vm500_vm15 = vcmp.eq.f32.partialorder %v490_v30, inf  ;;  %v503_v39 = vand.u32 2147483648, %v490_v30  ;;  %vm502_vm0 = vcmp.eq.f32.partialorder %v490_v30, 0.0 }
 0x45d   :  { %v705_v31 = vpop.eup %704 }
 0x45e   :  { %v492_v32 = vmul.f32 %v705_v31, %v487_v29 }
 0x460   :  { %v494_v34 = vsel %vm493_vm13, %v487_v29, %v492_v32 }
 0x461   :  { %v707_v35 = vpop.eup %706  ;;  %v497_v36 = vsel %vm495_vm14, %v496_v33, %v494_v34 }
 0x462   :  { %v505_v37 = vmax.f32 %v497_v36, 1e-12  ;;  %v499_v38 = vmul.f32 %v707_v35, %v490_v30 }
 0x464   :  { %708 = vrcp.f32 %v505_v37  ;;  %v501_v40 = vsel %vm500_vm15, %v490_v30, %v499_v38 }
 0x465   :  { %v504_v41 = vsel %vm502_vm0, %v503_v39, %v501_v40 }
 0x466   :  { %v506_v42 = vmax.f32 %v504_v41, 1e-12 }
 0x468   :  { %710 = vrcp.f32 %v506_v42 }
 0x46e   :  { %v709_v45 = vpop.eup %708 }
 0x46f   :  { %v508_v46 = vmul.f32 %v709_v45, %v480_v18 }
 0x471   :  { %v585_v47 = vadd.f32 %v579_v44, %v508_v46 }
 0x472   :  { %v711_v48 = vpop.eup %710 }
 0x473   :  { %587 = vst.msk [vmem:[#allocation8] sm:$0xff] %vm484_vm8, %v585_v47  ;;  %v510_v49 = vmul.f32 %v711_v48, %v481_v21 }
 0x475   :  { %v586_v51 = vadd.f32 %v582_v50, %v510_v49 }
 0x477   :  { %588 = vst.msk [vmem:[#allocation8 + $0x8] sm:$0xff] %vm484_vm8, %v586_v51 }
 0x478   :  { %789 = shalt.err (!%p786_p0)
}
 0x479   :  { %s790_s5 = scalar_lea.hbm %s1061_s17, 256 }
 0x47a   :  { %p791_p1 = scmp.ne.s32.totalorder %s1061_s17, %s790_s5  ;;  %p794_p2 = scmp.lt.u32.totalorder %s790_s5, %s1061_s17 }
 0x47c   :  { %p796_p3 = pnand %p794_p2, %p791_p1 }
 0x47e   :  { %799 = shalt.err (!%p796_p3)
}
 0x47f   :  { %s814_s0 = smov 128   ;;  %s815_s30 = smov 8  }
 0x480   :  { %600 = dma.vmem_to_hbm [thread:$0]  %s595_s13, 256, %s1061_s17, [#allocation4], %s814_s0, %s814_s0, %s815_s30  }
 0x481   :  { %804 = dma.done.wait [#allocation4], 256  }
 0x482   :  { %805 = vsyncadd [#allocation4], 4294967040 }
 0x483   :  { %604 = vsyncpa [#allocation3], 1 }
 0x484   :  { %605 = vsyncpa [#allocation6], 1 }
 0x485   :  { %606 = vsyncpa [#allocation4], 1 }

</bundles_post_ra>
